<compile_context>
chip_gen: v5e
topology: v5e:2x2
jax: 0.10.0
libtpu: 0.0.40
codegen_flags: <defaults>
</compile_context>

<pallas_src>
import jax
import jax.numpy as jnp
from jax.experimental import pallas as pl
from jax.experimental.pallas import tpu as pltpu

NEG_SLOPE = 0.01  # nn.LeakyReLU() default


def _leaky_relu(x):
    return jnp.where(x > 0, x, NEG_SLOPE * x)


def bmav_kernel(img_ref, view_ref, wbb_ref, bbb_ref,
                w1bb_ref, w1v_ref, b1_ref, w2_ref, b2_ref,
                out_ref, acc_ref):
    """grid = (batch_blocks, spatial_blocks); spatial axis is the reduction."""
    sj = pl.program_id(1)

    # ---- init per-channel spatial-sum accumulator (f32) ---------------------
    @pl.when(sj == 0)
    def _():
        acc_ref[...] = jnp.zeros_like(acc_ref)

    # ---- streamed spatial reduction (bf16 tile -> f32 accumulate) -----------
    img = img_ref[...].astype(jnp.float32)              # [B_t, C, hw_tile]
    acc_ref[...] += jnp.sum(img, axis=-1)                # [B_t, C]

    # ---- head: runs once per batch block, on the last spatial step ----------
    @pl.when(sj == pl.num_programs(1) - 1)
    def _():
        # backbone stand-in: pooled features -> Linear (1/HW folded into wbb)
        pooled = acc_ref[...]                                                   # [B_t, C]
        bb = jnp.dot(pooled, wbb_ref[...],
                     preferred_element_type=jnp.float32) + bbb_ref[...]         # [B_t, F_bb]
        h = _leaky_relu(bb)                               # dropout_1 = identity (eval)

        # fc1 with split weight (no concat): K = F_bb (lane aligned) + D_view tail
        view = view_ref[...].astype(jnp.float32)                                # [B_t, D_view]
        z1 = _leaky_relu(
            jnp.dot(h, w1bb_ref[...], preferred_element_type=jnp.float32)
            + jnp.dot(view, w1v_ref[...], preferred_element_type=jnp.float32)
            + b1_ref[...])                                                      # [B_t, 256]

        # dropout_2 = identity (eval); fc2 to the lane-padded output slab
        out_ref[...] = (jnp.dot(z1, w2_ref[...], preferred_element_type=jnp.float32)
                        + b2_ref[...]).astype(out_ref.dtype)                    # [B_t, NC_pad]


def _pick_b_tile(b):
    for cand in (256, 128, 64, 32, 16, 8):
        if b % cand == 0:
            return cand
    return b  # small batch: single full-extent block


def _pick_hw_tile(hw):
    if hw % 128 != 0:
        return hw  # must equal the full extent if not lane aligned
    for cand in (4096, 2048, 1024, 512, 256, 128):
        if hw % cand == 0:
            return cand
    return hw


def bmav_forward(x_img, x_view, params, *, b_tile=None, hw_tile=None):
    """x_img: [B, C, H, W] (NCHW), x_view: [B, D_view] -> [B, num_classes]."""
    B, C, H, W = x_img.shape
    HW = H * W
    D_view = x_view.shape[1]
    F_bb = params["w_bb"].shape[1]
    hidden = params["w1"].shape[1]
    num_classes = params["w2"].shape[1]
    assert params["w1"].shape[0] == F_bb + D_view

    # stream the image as bf16 (upstream should ideally already supply bf16)
    img = x_img.reshape(B, C, HW)
    if img.dtype != jnp.bfloat16:
        img = img.astype(jnp.bfloat16)
    view = x_view.astype(jnp.float32)

    # fold 1/(H*W) into the backbone weight -> kernel only sums over spatial
    w_bb = (params["w_bb"] / float(HW)).astype(jnp.float32)
    b_bb = params["b_bb"].astype(jnp.float32)
    # split fc1 so the in-kernel concat disappears
    w1_bb = params["w1"][:F_bb].astype(jnp.float32)
    w1_vw = params["w1"][F_bb:].astype(jnp.float32)
    b1 = params["b1"].astype(jnp.float32)
    # pad fc2 / output to a lane-dense (multiple-of-128) width
    nc_pad = max(128, ((num_classes + 127) // 128) * 128)
    w2 = jnp.pad(params["w2"].astype(jnp.float32), ((0, 0), (0, nc_pad - num_classes)))
    b2 = jnp.pad(params["b2"].astype(jnp.float32), ((0, 0), (0, nc_pad - num_classes)))

    bt = b_tile or _pick_b_tile(B)
    ht = hw_tile or _pick_hw_tile(HW)
    assert B % bt == 0 and HW % ht == 0
    grid = (B // bt, HW // ht)

    out_padded = pl.pallas_call(
        bmav_kernel,
        out_shape=jax.ShapeDtypeStruct((B, nc_pad), jnp.float32),
        grid_spec=pltpu.PrefetchScalarGridSpec(
            num_scalar_prefetch=0,
            grid=grid,
            in_specs=[
                # streamed image tiles: (batch block, all channels, spatial block)
                pl.BlockSpec((bt, C, ht), lambda bi, sj: (bi, 0, sj)),
                # per-batch-block view features (constant over the spatial axis)
                pl.BlockSpec((bt, D_view), lambda bi, sj: (bi, 0)),
                # weights/biases: constant index maps -> fetched once, VMEM resident
                pl.BlockSpec((C, F_bb), lambda bi, sj: (0, 0)),
                pl.BlockSpec((1, F_bb), lambda bi, sj: (0, 0)),
                pl.BlockSpec((F_bb, hidden), lambda bi, sj: (0, 0)),
                pl.BlockSpec((D_view, hidden), lambda bi, sj: (0, 0)),
                pl.BlockSpec((1, hidden), lambda bi, sj: (0, 0)),
                pl.BlockSpec((hidden, nc_pad), lambda bi, sj: (0, 0)),
                pl.BlockSpec((1, nc_pad), lambda bi, sj: (0, 0)),
            ],
            out_specs=pl.BlockSpec((bt, nc_pad), lambda bi, sj: (bi, 0)),
            scratch_shapes=[pltpu.VMEM((bt, C), jnp.float32)],
        ),
        compiler_params=pltpu.CompilerParams(
            dimension_semantics=("parallel", "arbitrary")),
    )(img, view, w_bb, b_bb, w1_bb, w1_vw, b1, w2, b2)

    return out_padded[:, :num_classes]


def bmav_reference(x_img, x_view, params):
    """Pure-JAX reference (same bf16 image quantization as the kernel)."""
    B, C, H, W = x_img.shape
    img = x_img.astype(jnp.bfloat16).astype(jnp.float32).reshape(B, C, H * W)
    pooled = jnp.mean(img, axis=-1)
    bb = pooled @ params["w_bb"] + params["b_bb"]
    h = _leaky_relu(bb)
    cat = jnp.concatenate([h, x_view], axis=-1)
    z1 = _leaky_relu(cat @ params["w1"] + params["b1"])
    return z1 @ params["w2"] + params["b2"]


def init_params(key, c_in, f_bb, d_view, num_classes):
    in_features = f_bb + d_view          # fc1 = nn.Linear(in_features, 256)
    hidden = 256
    ks = jax.random.split(key, 6)
    scale = 0.05
    return {
        "w_bb": scale * jax.random.normal(ks[0], (c_in, f_bb), jnp.float32),
        "b_bb": scale * jax.random.normal(ks[1], (1, f_bb), jnp.float32),
        "w1":   scale * jax.random.normal(ks[2], (in_features, hidden), jnp.float32),
        "b1":   scale * jax.random.normal(ks[3], (1, hidden), jnp.float32),
        "w2":   scale * jax.random.normal(ks[4], (hidden, num_classes), jnp.float32),
        "b2":   scale * jax.random.normal(ks[5], (1, num_classes), jnp.float32),
    }


if __name__ == "__main__":
    # Small deterministic shapes consistent with the module's forward.
    B, C, H, W = 8, 3, 16, 16     # x[0]: image batch (NCHW)
    D_VIEW = 8                    # x[1]: view feature appended after backbone
    F_BB = 128                    # backbone stand-in feature width
    NUM_CLASSES = 10

    key = jax.random.PRNGKey(0)
    k_img, k_view, k_par = jax.random.split(key, 3)

    x_img = jax.random.normal(k_img, (B, C, H, W), jnp.float32)
    x_view = jax.random.normal(k_view, (B, D_VIEW), jnp.float32)
    params = init_params(k_par, C, F_BB, D_VIEW, NUM_CLASSES)

    # hw_tile=128 -> 2 spatial grid steps, exercising the accumulate/finalize path.
    out = bmav_forward(x_img, x_view, params, hw_tile=128)
    jax.block_until_ready(out)
    assert out.shape == (B, NUM_CLASSES)

    ref = bmav_reference(x_img, x_view, params)
    assert bool(jnp.all(jnp.isfinite(out)))
    assert bool(jnp.allclose(out, ref, rtol=5e-2, atol=5e-3))
    print("KERNEL_OK")
</pallas_src>

<mosaic_0001>
module attributes {stable_mosaic.version = 11 : i64} {
  func.func @bmav_kernel(%arg0: i32, %arg1: i32, %arg2: memref<8x3x128xbf16, #tpu.memory_space<vmem>>, %arg3: memref<8x8xf32, #tpu.memory_space<vmem>>, %arg4: memref<3x128xf32, #tpu.memory_space<vmem>>, %arg5: memref<1x128xf32, #tpu.memory_space<vmem>>, %arg6: memref<128x256xf32, #tpu.memory_space<vmem>>, %arg7: memref<8x256xf32, #tpu.memory_space<vmem>>, %arg8: memref<1x256xf32, #tpu.memory_space<vmem>>, %arg9: memref<256x128xf32, #tpu.memory_space<vmem>>, %arg10: memref<1x128xf32, #tpu.memory_space<vmem>>, %arg11: memref<8x128xf32, #tpu.memory_space<vmem>>, %arg12: memref<8x3xf32, #tpu.memory_space<vmem>>) attributes {dimension_semantics = [#tpu.dimension_semantics<parallel>, #tpu.dimension_semantics<arbitrary>], iteration_bounds = array<i64: 1, 2>, scalar_prefetch = 0 : i64, scratch_operands = 1 : i64, tpu.core_type = #tpu.core_type<tc>, window_params = [{transform_indices = @transform_0, window_bounds = array<i64: 8, 3, 128>}, {transform_indices = @transform_1, window_bounds = array<i64: 8, 8>}, {pipeline_mode = #tpu.pipeline_mode<synchronous>, transform_indices = @transform_2, window_bounds = array<i64: 3, 128>}, {pipeline_mode = #tpu.pipeline_mode<synchronous>, transform_indices = @transform_3, window_bounds = array<i64: 1, 128>}, {pipeline_mode = #tpu.pipeline_mode<synchronous>, transform_indices = @transform_4, window_bounds = array<i64: 128, 256>}, {pipeline_mode = #tpu.pipeline_mode<synchronous>, transform_indices = @transform_5, window_bounds = array<i64: 8, 256>}, {pipeline_mode = #tpu.pipeline_mode<synchronous>, transform_indices = @transform_6, window_bounds = array<i64: 1, 256>}, {pipeline_mode = #tpu.pipeline_mode<synchronous>, transform_indices = @transform_7, window_bounds = array<i64: 256, 128>}, {pipeline_mode = #tpu.pipeline_mode<synchronous>, transform_indices = @transform_8, window_bounds = array<i64: 1, 128>}, {transform_indices = @transform_9, window_bounds = array<i64: 8, 128>}]} {
    %c0_i32 = arith.constant 0 : i32
    %0 = arith.cmpi eq, %arg1, %c0_i32 : i32
    %1 = arith.extui %0 : i1 to i32
    %c0_i32_0 = arith.constant 0 : i32
    %2 = arith.cmpi ne, %1, %c0_i32_0 : i32
    scf.if %2 {
      %cst_8 = arith.constant 0.000000e+00 : f32
      %12 = vector.broadcast %cst_8 : f32 to vector<8x3xf32>
      %c0_9 = arith.constant 0 : index
      %c0_10 = arith.constant 0 : index
      %13 = vector.load %arg12[%c0_9, %c0_10] : memref<8x3xf32, #tpu.memory_space<vmem>>, vector<8x3xf32>
      tpu.vector_store %arg12[%c0_9, %c0_10], %12 {strides = array<i32>} : memref<8x3xf32, #tpu.memory_space<vmem>>, vector<8x3xf32>,
    } else {
    }
    %c0 = arith.constant 0 : index
    %c0_1 = arith.constant 0 : index
    %c0_2 = arith.constant 0 : index
    %3 = vector.load %arg2[%c0, %c0_1, %c0_2] : memref<8x3x128xbf16, #tpu.memory_space<vmem>>, vector<8x3x128xbf16>
    %4 = arith.extf %3 : vector<8x3x128xbf16> to vector<8x3x128xf32>
    %c0_3 = arith.constant 0 : index
    %c0_4 = arith.constant 0 : index
    %5 = vector.load %arg12[%c0_3, %c0_4] : memref<8x3xf32, #tpu.memory_space<vmem>>, vector<8x3xf32>
    %cst = arith.constant dense<0.000000e+00> : vector<8x3xf32>
    %6 = vector.multi_reduction <add>, %4, %cst [2] : vector<8x3x128xf32> to vector<8x3xf32>
    %7 = arith.addf %5, %6 : vector<8x3xf32>
    %c0_5 = arith.constant 0 : index
    %c0_6 = arith.constant 0 : index
    %8 = vector.load %arg12[%c0_5, %c0_6] : memref<8x3xf32, #tpu.memory_space<vmem>>, vector<8x3xf32>
    tpu.vector_store %arg12[%c0_5, %c0_6], %7 {strides = array<i32>} : memref<8x3xf32, #tpu.memory_space<vmem>>, vector<8x3xf32>,
    %c1_i32 = arith.constant 1 : i32
    %9 = arith.cmpi eq, %arg1, %c1_i32 : i32
    %10 = arith.extui %9 : i1 to i32
    %c0_i32_7 = arith.constant 0 : i32
    %11 = arith.cmpi ne, %10, %c0_i32_7 : i32
    scf.if %11 {
      %c0_8 = arith.constant 0 : index
      %c0_9 = arith.constant 0 : index
      %12 = vector.load %arg12[%c0_8, %c0_9] : memref<8x3xf32, #tpu.memory_space<vmem>>, vector<8x3xf32>
      %c0_10 = arith.constant 0 : index
      %c0_11 = arith.constant 0 : index
      %13 = vector.load %arg4[%c0_10, %c0_11] : memref<3x128xf32, #tpu.memory_space<vmem>>, vector<3x128xf32>
      %cst_12 = arith.constant dense<0.000000e+00> : vector<8x128xf32>
      %14 = tpu.matmul %12, %13, %cst_12 {dimension_numbers = #tpu.dot_dimension_numbers<[1], [0], [0], [1], [0, 0, 1, 1], [], []>} : vector<8x3xf32>, vector<3x128xf32>, vector<8x128xf32> -> vector<8x128xf32>
      %c0_13 = arith.constant 0 : index
      %c0_14 = arith.constant 0 : index
      %15 = vector.load %arg5[%c0_13, %c0_14] : memref<1x128xf32, #tpu.memory_space<vmem>>, vector<1x128xf32>
      %16 = vector.broadcast %15 : vector<1x128xf32> to vector<8x128xf32>
      %17 = arith.addf %14, %16 : vector<8x128xf32>
      %cst_15 = arith.constant 0.000000e+00 : f32
      %18 = vector.broadcast %cst_15 : f32 to vector<8x128xf32>
      %19 = arith.cmpf ogt, %17, %18 : vector<8x128xf32>
      %cst_16 = arith.constant 0.00999999977 : f32
      %20 = vector.broadcast %cst_16 : f32 to vector<8x128xf32>
      %21 = arith.mulf %20, %17 : vector<8x128xf32>
      %22 = arith.select %19, %17, %21 : vector<8x128xi1>, vector<8x128xf32>
      %c0_17 = arith.constant 0 : index
      %c0_18 = arith.constant 0 : index
      %23 = vector.load %arg3[%c0_17, %c0_18] : memref<8x8xf32, #tpu.memory_space<vmem>>, vector<8x8xf32>
      %c0_19 = arith.constant 0 : index
      %c0_20 = arith.constant 0 : index
      %24 = vector.load %arg6[%c0_19, %c0_20] : memref<128x256xf32, #tpu.memory_space<vmem>>, vector<128x256xf32>
      %cst_21 = arith.constant dense<0.000000e+00> : vector<8x256xf32>
      %25 = tpu.matmul %22, %24, %cst_21 {dimension_numbers = #tpu.dot_dimension_numbers<[1], [0], [0], [1], [0, 0, 1, 1], [], []>} : vector<8x128xf32>, vector<128x256xf32>, vector<8x256xf32> -> vector<8x256xf32>
      %c0_22 = arith.constant 0 : index
      %c0_23 = arith.constant 0 : index
      %26 = vector.load %arg7[%c0_22, %c0_23] : memref<8x256xf32, #tpu.memory_space<vmem>>, vector<8x256xf32>
      %cst_24 = arith.constant dense<0.000000e+00> : vector<8x256xf32>
      %27 = tpu.matmul %23, %26, %cst_24 {dimension_numbers = #tpu.dot_dimension_numbers<[1], [0], [0], [1], [0, 0, 1, 1], [], []>} : vector<8x8xf32>, vector<8x256xf32>, vector<8x256xf32> -> vector<8x256xf32>
      %28 = arith.addf %25, %27 : vector<8x256xf32>
      %c0_25 = arith.constant 0 : index
      %c0_26 = arith.constant 0 : index
      %29 = vector.load %arg8[%c0_25, %c0_26] : memref<1x256xf32, #tpu.memory_space<vmem>>, vector<1x256xf32>
      %30 = vector.broadcast %29 : vector<1x256xf32> to vector<8x256xf32>
      %31 = arith.addf %28, %30 : vector<8x256xf32>
      %cst_27 = arith.constant 0.000000e+00 : f32
      %32 = vector.broadcast %cst_27 : f32 to vector<8x256xf32>
      %33 = arith.cmpf ogt, %31, %32 : vector<8x256xf32>
      %cst_28 = arith.constant 0.00999999977 : f32
      %34 = vector.broadcast %cst_28 : f32 to vector<8x256xf32>
      %35 = arith.mulf %34, %31 : vector<8x256xf32>
      %36 = arith.select %33, %31, %35 : vector<8x256xi1>, vector<8x256xf32>
      %c0_29 = arith.constant 0 : index
      %c0_30 = arith.constant 0 : index
      %37 = vector.load %arg9[%c0_29, %c0_30] : memref<256x128xf32, #tpu.memory_space<vmem>>, vector<256x128xf32>
      %cst_31 = arith.constant dense<0.000000e+00> : vector<8x128xf32>
      %38 = tpu.matmul %36, %37, %cst_31 {dimension_numbers = #tpu.dot_dimension_numbers<[1], [0], [0], [1], [0, 0, 1, 1], [], []>} : vector<8x256xf32>, vector<256x128xf32>, vector<8x128xf32> -> vector<8x128xf32>
      %c0_32 = arith.constant 0 : index
      %c0_33 = arith.constant 0 : index
      %39 = vector.load %arg10[%c0_32, %c0_33] : memref<1x128xf32, #tpu.memory_space<vmem>>, vector<1x128xf32>
      %40 = vector.broadcast %39 : vector<1x128xf32> to vector<8x128xf32>
      %41 = arith.addf %38, %40 : vector<8x128xf32>
      %c0_34 = arith.constant 0 : index
      %c0_35 = arith.constant 0 : index
      %42 = vector.load %arg11[%c0_34, %c0_35] : memref<8x128xf32, #tpu.memory_space<vmem>>, vector<8x128xf32>
      tpu.vector_store %arg11[%c0_34, %c0_35], %41 {strides = array<i32>} : memref<8x128xf32, #tpu.memory_space<vmem>>, vector<8x128xf32>,
    } else {
    }
    return
  }
  func.func @transform_0(%arg0: i32, %arg1: i32) -> (i32, i32, i32) {
    %c0_i32 = arith.constant 0 : i32
    %c0_i32_0 = arith.constant 0 : i32
    return %arg0, %c0_i32, %arg1 : i32, i32, i32
  }
  func.func @transform_1(%arg0: i32, %arg1: i32) -> (i32, i32) {
    %c0_i32 = arith.constant 0 : i32
    %c0_i32_0 = arith.constant 0 : i32
    return %arg0, %c0_i32 : i32, i32
  }
  func.func @transform_2(%arg0: i32, %arg1: i32) -> (i32, i32) {
    %c0_i32 = arith.constant 0 : i32
    %c0_i32_0 = arith.constant 0 : i32
    %c0_i32_1 = arith.constant 0 : i32
    return %c0_i32, %c0_i32_0 : i32, i32
  }
  func.func @transform_3(%arg0: i32, %arg1: i32) -> (i32, i32) {
    %c0_i32 = arith.constant 0 : i32
    %c0_i32_0 = arith.constant 0 : i32
    %c0_i32_1 = arith.constant 0 : i32
    return %c0_i32, %c0_i32_0 : i32, i32
  }
  func.func @transform_4(%arg0: i32, %arg1: i32) -> (i32, i32) {
    %c0_i32 = arith.constant 0 : i32
    %c0_i32_0 = arith.constant 0 : i32
    %c0_i32_1 = arith.constant 0 : i32
    return %c0_i32, %c0_i32_0 : i32, i32
  }
  func.func @transform_5(%arg0: i32, %arg1: i32) -> (i32, i32) {
    %c0_i32 = arith.constant 0 : i32
    %c0_i32_0 = arith.constant 0 : i32
    %c0_i32_1 = arith.constant 0 : i32
    return %c0_i32, %c0_i32_0 : i32, i32
  }
  func.func @transform_6(%arg0: i32, %arg1: i32) -> (i32, i32) {
    %c0_i32 = arith.constant 0 : i32
    %c0_i32_0 = arith.constant 0 : i32
    %c0_i32_1 = arith.constant 0 : i32
    return %c0_i32, %c0_i32_0 : i32, i32
  }
  func.func @transform_7(%arg0: i32, %arg1: i32) -> (i32, i32) {
    %c0_i32 = arith.constant 0 : i32
    %c0_i32_0 = arith.constant 0 : i32
    %c0_i32_1 = arith.constant 0 : i32
    return %c0_i32, %c0_i32_0 : i32, i32
  }
  func.func @transform_8(%arg0: i32, %arg1: i32) -> (i32, i32) {
    %c0_i32 = arith.constant 0 : i32
    %c0_i32_0 = arith.constant 0 : i32
    %c0_i32_1 = arith.constant 0 : i32
    return %c0_i32, %c0_i32_0 : i32, i32
  }
  func.func @transform_9(%arg0: i32, %arg1: i32) -> (i32, i32) {
    %c0_i32 = arith.constant 0 : i32
    %c0_i32_0 = arith.constant 0 : i32
    return %arg0, %c0_i32 : i32, i32
  }
}

</mosaic_0001>

<bundles_post_ra>
// kernel: tpu_custom_call.1
= control target key start
LH: loop header
LB: loop body
LE: loop exit
PB: predicated region body
PF: predicated region fallthrough
CT: control target
= control target key end

     0   :  { %14 = vsyncpa [#allocation5], 0  ;;  %s1345_s0 = inlined_call_operand.vmem [shape: bf16[8,3,256], index: 0, kind: input, shape index: {}]   ;;  %s1346_s1 = inlined_call_operand.vmem [shape: f32[8,8], index: 1, kind: input, shape index: {}]   ;;  %s1347_s2 = inlined_call_operand.vmem [shape: f32[3,128], index: 2, kind: input, shape index: {}]   ;;  %s1348_s3 = inlined_call_operand.vmem [shape: f32[1,128], index: 3, kind: input, shape index: {}]   ;;  %s1349_s4 = inlined_call_operand.hbm [shape: f32[128,256], index: 4, kind: input, shape index: {}]   ;;  %s1350_s5 = inlined_call_operand.vmem [shape: f32[8,256], index: 5, kind: input, shape index: {}]   ;;  %s1351_s6 = inlined_call_operand.vmem [shape: f32[1,256], index: 6, kind: input, shape index: {}]   ;;  %s1352_s7 = inlined_call_operand.hbm [shape: f32[256,128], index: 7, kind: input, shape index: {}]   ;;  %s1353_s8 = inlined_call_operand.vmem [shape: f32[1,128], index: 8, kind: input, shape index: {}]   ;;  %s1354_s9 = inlined_call_operand.hbm [shape: f32[8,128], index: 9, kind: output, shape index: {}]  }
   0x1   :  { %15 = vsyncpa [#allocation8], 0 }
   0x2   :  { %16 = vsyncpa [#allocation6], 0  ;;  %s1198_s30 = smov 0   ;;  %s1200_s10 = smov 0  }
   0x3   :  { %s1202_s11 = smov 0   ;;  %s1204_s12 = smov 0  }
   0x4   :  { %s1206_s13 = smov 0  }
   0x5 LB: > { %s1355_s14 = sadd.s32 4294967295, %s1138_s13   ;;  %s31_s15 = sadd.s32 1, %s1134_s12  ;;  %s1138_s13 = sphi %s1206_s13, %s22_s13   ;;  %s1134_s12 = sphi %s1204_s12, %s1368_s12   ;;  %s1130_s11 = sphi %s1202_s11, %s1367_s11   ;;  %s1126_s10 = sphi %s1200_s10, %s1366_s10   ;;  %s1122_s30 = sphi %s1198_s30, %s1365_s30  }
   0x6   : > { %p32_p0 = scmp.ge.s32.totalorder %s31_s15, 2  ;;  %s43_s16 = sadd.s32 1, %s1126_s10 }
   0x7   : > { %p50_p1 = scmp.ne.s32.totalorder %s1126_s10, %s1122_s30  ;;  %p51_p2 = scmp.eq.s32.totalorder %s1138_s13, 0 }
   0x8   : > { %s1370_s15 = smov (%p32_p0, %s31_s15), 0  ;;  %p904_p4 = scmp.ge.s32.totalorder %s1138_s13, 1 }
   0x9   : > { %1357 = sst [smem:[#allocation13_spill]] %s1370_s15  ;;  %p1231_p3 = por %p51_p2, %p50_p1 }
   0xa   : > { %s39_s18 = ssub.s32 %s1134_s12, %s1370_s15  ;;  %p266_p5 = scmp.lt.s32.totalorder %s1138_s13, 3 }
   0xb   : > { %p41_p6 = scmp.eq.s32.totalorder %s39_s18, 0  ;;  %p1245_p8 = scmp.eq.s32.totalorder %s1355_s14, 0 }
   0xc   : > { %p1239_p7 = pnand %p904_p4, %p266_p5  ;;  %s290_s24 = sshll.u32 %s1349_s4, 4  ;;  %s291_s24 = int_to_ptr.hbm [resolvable:$true] %s290_s24 }
   0xd   : > { %s1250_s21 = scalar_select %p41_p6, %s1126_s10, %s43_s16  }
   0xe   : > { %p937_p9 = pneg %p1239_p7  ;;  %s1140_s25 = smov [#allocation4]  }
   0xf   : > { %1361 = sst [smem:[#allocation14_spill]] %s1250_s21  ;;  %s292_s26 = sshll.u32 %s1140_s25, 4  ;;  %s293_s26 = int_to_ptr.vmem [resolvable:$true] %s292_s26 }
  0x10   : > { %p938_p10 = pnand %p1245_p8, %p937_p9  ;;  %s1141_s27 = smov 256  }
  0x11   : > { %s1142_s28 = smov 16   ;;  %s310_s16 = sshll.u32 %s1352_s7, 4  ;;  %s311_s16 = int_to_ptr.hbm [resolvable:$true] %s310_s16 }
  0x12   : > { %940 = dma.hbm_to_vmem [thread:$0]  (!%p938_p10), %s291_s24, 4096, %s293_s26, [#allocation5], %s1141_s27, %s1141_s27, %s1142_s28  }
  0x13   : > { %s1143_s14 = smov [#allocation7]   ;;  %s1144_s21 = smov 128  }
  0x14   : > { %s312_s15 = sshll.u32 %s1143_s14, 4  ;;  %s1145_s22 = smov 8   ;;  %s313_s15 = int_to_ptr.vmem [resolvable:$true] %s312_s15 }
  0x15   : > { %943 = dma.hbm_to_vmem [thread:$0]  (!%p938_p10), %s311_s16, 4096, %s313_s15, [#allocation8], %s1144_s21, %s1144_s21, %s1145_s22  }
  0x16   : > { %p908_p11 = scmp.ge.s32.totalorder %s1138_s13, 2 }
  0x18   : > { %325 = sbr.rel (%p908_p11) target bundleno = 41 (0x29), region = 48 }
  0x1d   : > { %328 = sbr.rel (!%p1231_p3) target bundleno = 41 (0x29), region = 52  ;;  %s330_s23 = sand.u32 (%p1231_p3), 1, %s1126_s10  }
  0x1e   : > { %s910_s24 = sshll.u32 (%p1231_p3), %s1134_s12, 1  ;;  %s909_s25 = sshll.u32 (%p1231_p3), %s330_s23, 4 }
  0x1f   : > { %s337_s28 = scalar_lea.vmem (%p1231_p3), %s1345_s0, %s910_s24  ;;  %s332_s14 = scalar_lea.vmem (%p1231_p3), [#allocation3], %s909_s25 }
  0x20   : > { %v354_v0 = vld [vmem:[%s337_s28] sm:$0x3] (%p1231_p3)  ;;  %v356_v1 = vld [vmem:[%s337_s28 + $0x4] sm:$0x3] (%p1231_p3)  ;;  %v358_v2 = vld [vmem:[%s337_s28 + $0x8] sm:$0x3] (%p1231_p3) }
  0x21   : > { %355 = vst [vmem:[%s332_s14] sm:$0x3] (%p1231_p3), %v354_v0  ;;  %v360_v3 = vld [vmem:[%s337_s28 + $0xc] sm:$0x3] (%p1231_p3)  ;;  %v362_v4 = vld [vmem:[%s337_s28 + $0x10] sm:$0x3] (%p1231_p3) }
  0x22   : > { %357 = vst [vmem:[%s332_s14 + $0x2] sm:$0x3] %v356_v1  ;;  %v364_v5 = vld [vmem:[%s337_s28 + $0x14] sm:$0x3]  ;;  %v366_v6 = vld [vmem:[%s337_s28 + $0x18] sm:$0x3] }
  0x23   : > { %359 = vst [vmem:[%s332_s14 + $0x4] sm:$0x3] %v358_v2  ;;  %v368_v7 = vld [vmem:[%s337_s28 + $0x1c] sm:$0x3] }
  0x24   : > { %361 = vst [vmem:[%s332_s14 + $0x6] sm:$0x3] %v360_v3 }
  0x25   : > { %363 = vst [vmem:[%s332_s14 + $0x8] sm:$0x3] %v362_v4 }
  0x26   : > { %365 = vst [vmem:[%s332_s14 + $0xa] sm:$0x3] %v364_v5 }
  0x27   : > { %367 = vst [vmem:[%s332_s14 + $0xc] sm:$0x3] %v366_v6 }
  0x28   : > { %369 = vst [vmem:[%s332_s14 + $0xe] sm:$0x3] %v368_v7 }
  0x29 PF: > { %412 = sbr.rel (%p1239_p7) target bundleno = 615 (0x267), region = 93  ;;  %s415_s15 = sand.u32 (!%p1239_p7), 1, %s1122_s30  }
  0x2a   : > { %s912_s17 = sshll.u32 (!%p1239_p7), %s415_s15, 4 }
  0x2b   : > { %s1273_s21 = scalar_lea.vmem (!%p1239_p7), [#allocation3], %s912_s17 }
  0x2e   : > { %1109 = dma.done.wait (%p1245_p8), [#allocation5], 4096  }
  0x2f   : > { %1111 = vsyncadd (%p1245_p8), [#allocation5], 4294963200 }
  0x30   : > { %1113 = dma.done.wait (%p1245_p8), [#allocation8], 4096  }
  0x31   : > { %1115 = vsyncadd (%p1245_p8), [#allocation8], 4294963200  ;;  %p915_p12 = scmp.ne.s32.totalorder %s1130_s11, 0 }
  0x33   : > { %467 = sbr.rel (%p915_p12) target bundleno = 58 (0x3a), region = 109 }
  0x38   : > { %vm468_vm0 = vcmask 23552   ;;  %v1146_v8 = vmov 0.0  }
  0x39   : > { %469 = vst.msk [vmem:[#allocation2] sm:$0xff] %vm468_vm0, %v1146_v8 }
  0x3a PF: > { %v470_v9 = vld [vmem:[%s1273_s21] sm:$0x3]  ;;  %vm487_vm1 = vcmask 1042432   ;;  %v472_v10 = vld [vmem:[%s1273_s21 + $0x4] sm:$0x3]  ;;  %v520_v35 = vlaneseq  ;;  %vm530_vm2 = vcmask 1041409  }
  0x3b   : > { %v478_v11 = vunpack.c.l.bf16 %v470_v9  ;;  %v480_v12 = vunpack.c.l.bf16 %v472_v10  ;;  %v474_v13 = vld [vmem:[%s1273_s21 + $0x8] sm:$0x3]  ;;  %v471_v15 = vld [vmem:[%s1273_s21 + $0x2] sm:$0x3]  ;;  %v473_v16 = vld [vmem:[%s1273_s21 + $0x6] sm:$0x3] }
  0x3c   : > { %v482_v14 = vunpack.c.l.bf16 %v474_v13  ;;  %v475_v19 = vld [vmem:[%s1273_s21 + $0xa] sm:$0x3]  ;;  %v479_v21 = vunpack.c.l.bf16 %v471_v15  ;;  %v481_v22 = vunpack.c.l.bf16 %v473_v16  ;;  %v476_v27 = vld [vmem:[%s1273_s21 + $0xc] sm:$0x3]  ;;  %v477_v28 = vld [vmem:[%s1273_s21 + $0xe] sm:$0x3] }
  0x3d   : > { %v488_v17 = vsel %vm487_vm1, %v478_v11, 0.0  ;;  %v494_v18 = vsel %vm487_vm1, %v480_v12, 0.0  ;;  %v483_v23 = vunpack.c.l.bf16 %v475_v19  ;;  %v484_v29 = vunpack.c.l.bf16 %v476_v27  ;;  %p916_p13 = scmp.ne.s32.totalorder %s1130_s11, 1 }
  0x3e   : > { %489 = vadd.xlane.f32.xlu0 %v488_v17  ;;  %495 = vadd.xlane.f32.xlu1 %v494_v18  ;;  %v500_v20 = vsel %vm487_vm1, %v482_v14, 0.0  ;;  %v491_v24 = vsel %vm487_vm1, %v479_v21, 0.0  ;;  %v497_v25 = vsel %vm487_vm1, %v481_v22, 0.0  ;;  %v485_v30 = vunpack.c.l.bf16 %v477_v28 }
  0x3f   : > { %501 = vadd.xlane.f32.xlu2 %v500_v20  ;;  %v503_v26 = vsel %vm487_vm1, %v483_v23, 0.0  ;;  %v506_v31 = vsel %vm487_vm1, %v484_v29, 0.0  ;;  %v521_v37 = vand.u32 127, %v520_v35  ;;  %vm532_vm3 = vcmask 1042434  }
  0x40   : > { %v509_v32 = vsel %vm487_vm1, %v485_v30, 0.0  ;;  %vm534_vm4 = vcmask 1043459   ;;  %vm536_vm5 = vcmask 1044484   ;;  %vm538_vm6 = vcmask 1045509   ;;  %v486_v56 = vld [vmem:[#allocation2] sm:$0xff] }
  0x41   : > { %vm540_vm7 = vcmask 1046534   ;;  %vm542_vm8 = vcmask 1047559   ;;  %vm546_vm9 = vcmask 23552  }
  0x46   : > { %492 = vadd.xlane.f32.xlu0 %v491_v24  ;;  %498 = vadd.xlane.f32.xlu1 %v497_v25 }
  0x47   : > { %504 = vadd.xlane.f32.xlu2 %v503_v26 }
  0x4e   : > { %507 = vadd.xlane.f32.xlu0 %v506_v31  ;;  %510 = vadd.xlane.f32.xlu1 %v509_v32 }
  0xb1   : > { %v490_v33 = vpop.xlane.xlu0 %489  ;;  %v496_v34 = vpop.xlane.xlu1 %495 }
  0xb2   : > { %v502_v36 = vpop.xlane.xlu2 %501  ;;  %v522_v40 = vperm.slane %v490_v33, %v521_v37  ;;  %v524_v43 = vperm.slane %v496_v34, %v521_v37 }
  0xb3   : > { %v526_v47 = vperm.slane %v502_v36, %v521_v37 }
  0xb9   : > { %v493_v38 = vpop.xlane.xlu0 %492  ;;  %v499_v39 = vpop.xlane.xlu1 %498 }
  0xba   : > { %v523_v41 = vperm.slane %v493_v38, %v521_v37  ;;  %v525_v42 = vperm.slane %v499_v39, %v521_v37  ;;  %v505_v45 = vpop.xlane.xlu2 %504 }
  0xbb   : > { %v527_v49 = vperm.slane %v505_v45, %v521_v37 }
  0xbc   : > { %v531_v44 = vsel %vm530_vm2, %v523_v41, %v522_v40 }
  0xbd   : > { %v533_v46 = vsel %vm532_vm3, %v524_v43, %v531_v44 }
  0xbe   : > { %v535_v48 = vsel %vm534_vm4, %v525_v42, %v533_v46 }
  0xbf   : > { %v537_v50 = vsel %vm536_vm5, %v526_v47, %v535_v48 }
  0xc0   : > { %v539_v55 = vsel %vm538_vm6, %v527_v49, %v537_v50 }
  0xc1   : > { %v508_v51 = vpop.xlane.xlu0 %507  ;;  %v511_v52 = vpop.xlane.xlu1 %510 }
  0xc2   : > { %v528_v53 = vperm.slane %v508_v51, %v521_v37  ;;  %v529_v54 = vperm.slane %v511_v52, %v521_v37 }
  0xc4   : > { %v541_v57 = vsel %vm540_vm7, %v528_v53, %v539_v55  ;;  %551 = sbr.rel (%p916_p13) target bundleno = 609 (0x261), region = 113 }
  0xc5   : > { %v543_v58 = vsel %vm542_vm8, %v529_v54, %v541_v57 }
  0xc6   : > { %v545_v59 = vadd.f32 %v543_v58, %v486_v56 }
  0xc8   : > { %547 = vst.msk [vmem:[#allocation2] sm:$0xff] %vm546_vm9, %v545_v59 }
  0xc9   : > { %v553_v60 = vld [vmem:[%s1347_s2] sm:$0x7]  ;;  %v618_v62 = vld [vmem:[#allocation4 + $0xf0] sm:$0xff]  ;;  %v616_v0 = vld [vmem:[#allocation4 + $0xe0] sm:$0xff]  ;;  %vm622_vm10 = vcmask 64512  }
  0xca   : > { %917 = vmatpush.msk.msra.mxu0 %vm487_vm1, %v553_v60  ;;  %666 = vmatpush.msra.mxu3 %v618_v62  ;;  %v619_v63 = vld [vmem:[#allocation4 + $0xf8] sm:$0xff]  ;;  %v617_v1 = vld [vmem:[#allocation4 + $0xe8] sm:$0xff]  ;;  %v614_v2 = vld [vmem:[#allocation4 + $0xd0] sm:$0xff] }
  0xcb   : > { %v615_v3 = vld [vmem:[#allocation4 + $0xd8] sm:$0xff]  ;;  %v612_v4 = vld [vmem:[#allocation4 + $0xc0] sm:$0xff]  ;;  %v613_v5 = vld [vmem:[#allocation4 + $0xc8] sm:$0xff] }
  0xcc   : > { %686 = vmatpush.msrb.mxu0 %v619_v63  ;;  %667 = vmatpush.msra.mxu3 %v616_v0  ;;  %v610_v6 = vld [vmem:[#allocation4 + $0xb0] sm:$0xff]  ;;  %v611_v7 = vld [vmem:[#allocation4 + $0xb8] sm:$0xff]  ;;  %v608_v8 = vld [vmem:[#allocation4 + $0xa0] sm:$0xff] }
  0xcd   : > { %v621_v9 = vld [vmem:[%s1350_s5 + $0x8] sm:$0xff]  ;;  %v609_v10 = vld [vmem:[#allocation4 + $0xa8] sm:$0xff]  ;;  %v606_v11 = vld [vmem:[#allocation4 + $0x90] sm:$0xff] }
  0xce   : > { %687 = vmatpush.msrb.mxu0 %v617_v1  ;;  %668 = vmatpush.msra.mxu3 %v614_v2  ;;  %v607_v12 = vld [vmem:[#allocation4 + $0x98] sm:$0xff]  ;;  %v604_v13 = vld [vmem:[#allocation4 + $0x80] sm:$0xff]  ;;  %v605_v14 = vld [vmem:[#allocation4 + $0x88] sm:$0xff] }
  0xcf   : > { %v552_v61 = vld [vmem:[#allocation2] sm:$0xff]  ;;  %661 = vmatpush.msra.mxu2 %v621_v9  ;;  %v602_v15 = vld [vmem:[#allocation4 + $0x70] sm:$0xff]  ;;  %v600_v17 = vld [vmem:[#allocation4 + $0x60] sm:$0xff] }
  0xd0   : > { %918 = vmatmul.msk.f32.vlgmr.msra.gmra.mxu0 %vm546_vm9, %v552_v61  ;;  %669 = vmatpush.msra.mxu3 %v612_v4  ;;  %v603_v16 = vld [vmem:[#allocation4 + $0x78] sm:$0xff]  ;;  %v601_v18 = vld [vmem:[#allocation4 + $0x68] sm:$0xff]  ;;  %v598_v19 = vld [vmem:[#allocation4 + $0x50] sm:$0xff] }
  0xd1   : > { %688 = vmatpush.msrb.mxu0 %v615_v3  ;;  %v599_v20 = vld [vmem:[#allocation4 + $0x58] sm:$0xff]  ;;  %v596_v21 = vld [vmem:[#allocation4 + $0x40] sm:$0xff]  ;;  %v597_v22 = vld [vmem:[#allocation4 + $0x48] sm:$0xff] }
  0xd2   : > { %670 = vmatpush.msra.mxu3 %v610_v6  ;;  %v594_v23 = vld [vmem:[#allocation4 + $0x30] sm:$0xff]  ;;  %v595_v24 = vld [vmem:[#allocation4 + $0x38] sm:$0xff]  ;;  %v592_v26 = vld [vmem:[#allocation4 + $0x20] sm:$0xff] }
  0xd3   : > { %689 = vmatpush.msrb.mxu0 %v613_v5  ;;  %v587_v25 = vld [vmem:[%s1346_s1] sm:$0xff]  ;;  %v593_v27 = vld [vmem:[#allocation4 + $0x28] sm:$0xff]  ;;  %v590_v28 = vld [vmem:[#allocation4 + $0x10] sm:$0xff] }
  0xd4   : > { %671 = vmatpush.msra.mxu3 %v608_v8  ;;  %920 = vmatmul.msk.f32.vlgmr.msra.gmra.mxu2 %vm622_vm10, %v587_v25  ;;  %v591_v29 = vld [vmem:[#allocation4 + $0x18] sm:$0xff]  ;;  %v588_v30 = vld [vmem:[#allocation4] sm:$0xff]  ;;  %v589_v31 = vld [vmem:[#allocation4 + $0x8] sm:$0xff] }
  0xd5   : > { %690 = vmatpush.msrb.mxu0 %v611_v7  ;;  %v620_v32 = vld [vmem:[%s1350_s5] sm:$0xff]  ;;  %v750_v34 = vld [vmem:[#allocation7 + $0xf0] sm:$0xff]  ;;  %v749_v36 = vld [vmem:[#allocation7 + $0xe8] sm:$0xff] }
  0xd6   : > { %672 = vmatpush.msra.mxu3 %v606_v11  ;;  %v751_v33 = vld [vmem:[#allocation7 + $0xf8] sm:$0xff]  ;;  %641 = vmatpush.msra.mxu1 %v620_v32  ;;  %v734_v37 = vld [vmem:[#allocation7 + $0x70] sm:$0xff]  ;;  %v748_v38 = vld [vmem:[#allocation7 + $0xe0] sm:$0xff] }
  0xd7   : > { %691 = vmatpush.msrb.mxu0 %v609_v10  ;;  %776 = vmatpush.msrb.mxu2 %v751_v33  ;;  %v735_v35 = vld [vmem:[#allocation7 + $0x78] sm:$0xff]  ;;  %v733_v39 = vld [vmem:[#allocation7 + $0x68] sm:$0xff]  ;;  %v732_v41 = vld [vmem:[#allocation7 + $0x60] sm:$0xff] }
  0xd8   : > { %673 = vmatpush.msra.mxu3 %v604_v13  ;;  %919 = vmatmul.msk.f32.vlgmr.msra.gmra.mxu1 %vm622_vm10, %v587_v25  ;;  %v747_v40 = vld [vmem:[#allocation7 + $0xd8] sm:$0xff]  ;;  %v746_v42 = vld [vmem:[#allocation7 + $0xd0] sm:$0xff]  ;;  %v745_v44 = vld [vmem:[#allocation7 + $0xc8] sm:$0xff] }
  0xd9   : > { %692 = vmatpush.msrb.mxu0 %v607_v12  ;;  %777 = vmatpush.msrb.mxu2 %v750_v34  ;;  %v731_v43 = vld [vmem:[#allocation7 + $0x58] sm:$0xff]  ;;  %v730_v45 = vld [vmem:[#allocation7 + $0x50] sm:$0xff]  ;;  %v744_v46 = vld [vmem:[#allocation7 + $0xc0] sm:$0xff] }
  0xda   : > { %674 = vmatpush.msra.mxu3 %v602_v15  ;;  %756 = vmatpush.msrb.mxu1 %v735_v35  ;;  %v729_v47 = vld [vmem:[#allocation7 + $0x48] sm:$0xff]  ;;  %v743_v48 = vld [vmem:[#allocation7 + $0xb8] sm:$0xff]  ;;  %v728_v49 = vld [vmem:[#allocation7 + $0x40] sm:$0xff] }
  0xdb   : > { %693 = vmatpush.msrb.mxu0 %v605_v14  ;;  %778 = vmatpush.msrb.mxu2 %v749_v36  ;;  %v742_v50 = vld [vmem:[#allocation7 + $0xb0] sm:$0xff]  ;;  %v727_v51 = vld [vmem:[#allocation7 + $0x38] sm:$0xff]  ;;  %v741_v52 = vld [vmem:[#allocation7 + $0xa8] sm:$0xff] }
  0xdc   : > { %675 = vmatpush.msra.mxu3 %v600_v17  ;;  %757 = vmatpush.msrb.mxu1 %v734_v37  ;;  %v740_v53 = vld [vmem:[#allocation7 + $0xa0] sm:$0xff]  ;;  %v998_v54 = vld [vmem:[%s1348_s3] ss:$0 sm:$0xff]  ;;  %v726_v59 = vld [vmem:[#allocation7 + $0x30] sm:$0xff] }
  0xdd   : > { %694 = vmatpush.msrb.mxu0 %v603_v16  ;;  %779 = vmatpush.msrb.mxu2 %v748_v38  ;;  %v739_v60 = vld [vmem:[#allocation7 + $0x98] sm:$0xff]  ;;  %v725_v61 = vld [vmem:[#allocation7 + $0x28] sm:$0xff]  ;;  %v738_v62 = vld [vmem:[#allocation7 + $0x90] sm:$0xff] }
  0xde   : > { %676 = vmatpush.msra.mxu3 %v598_v19  ;;  %758 = vmatpush.msrb.mxu1 %v733_v39  ;;  %v724_v63 = vld [vmem:[#allocation7 + $0x20] sm:$0xff]  ;;  %v737_v0 = vld [vmem:[#allocation7 + $0x88] sm:$0xff]  ;;  %v723_v1 = vld [vmem:[#allocation7 + $0x18] sm:$0xff] }
  0xdf   : > { %695 = vmatpush.msrb.mxu0 %v601_v18  ;;  %780 = vmatpush.msrb.mxu2 %v747_v40  ;;  %v736_v2 = vld [vmem:[#allocation7 + $0x80] sm:$0xff]  ;;  %v722_v3 = vld [vmem:[#allocation7 + $0x10] sm:$0xff]  ;;  %v721_v4 = vld [vmem:[#allocation7 + $0x8] sm:$0xff] }
  0xe0   : > { %677 = vmatpush.msra.mxu3 %v596_v21  ;;  %759 = vmatpush.msrb.mxu1 %v732_v41  ;;  %v720_v5 = vld [vmem:[#allocation7] sm:$0xff]  ;;  %v706_v6 = vld [vmem:[%s1351_s6] sm:$0x3] }
  0xe1   : > { %696 = vmatpush.msrb.mxu0 %v599_v20  ;;  %781 = vmatpush.msrb.mxu2 %v746_v42  ;;  %v709_v8 = vperm.slane %v706_v6, 1  ;;  %v708_v13 = vperm.slane %v706_v6, 0  ;;  %v999_v21 = vld [vmem:[%s1353_s8] ss:$0 sm:$0xff] }
  0xe2   : > { %678 = vmatpush.msra.mxu3 %v594_v23  ;;  %760 = vmatpush.msrb.mxu1 %v731_v43 }
  0xe3   : > { %697 = vmatpush.msrb.mxu0 %v597_v22  ;;  %782 = vmatpush.msrb.mxu2 %v745_v44 }
  0xe4   : > { %679 = vmatpush.msra.mxu3 %v592_v26  ;;  %761 = vmatpush.msrb.mxu1 %v730_v45 }
  0xe5   : > { %698 = vmatpush.msrb.mxu0 %v595_v24  ;;  %783 = vmatpush.msrb.mxu2 %v744_v46 }
  0xe6   : > { %680 = vmatpush.msra.mxu3 %v590_v28  ;;  %762 = vmatpush.msrb.mxu1 %v729_v47 }
  0xe7   : > { %699 = vmatpush.msrb.mxu0 %v593_v27  ;;  %784 = vmatpush.msrb.mxu2 %v743_v48 }
  0xe8   : > { %681 = vmatpush.msra.mxu3 %v588_v30  ;;  %763 = vmatpush.msrb.mxu1 %v728_v49 }
  0xe9   : > { %700 = vmatpush.msrb.mxu0 %v591_v29  ;;  %785 = vmatpush.msrb.mxu2 %v742_v50 }
  0xea   : > { %764 = vmatpush.msrb.mxu1 %v727_v51 }
  0xeb   : > { %701 = vmatpush.msrb.mxu0 %v589_v31  ;;  %786 = vmatpush.msrb.mxu2 %v741_v52 }
  0xec   : > { %765 = vmatpush.msrb.mxu1 %v726_v59 }
  0xed   : > { %787 = vmatpush.msrb.mxu2 %v740_v53 }
  0xee   : > { %766 = vmatpush.msrb.mxu1 %v725_v61 }
  0xef   : > { %788 = vmatpush.msrb.mxu2 %v739_v60 }
  0xf0   : > { %767 = vmatpush.msrb.mxu1 %v724_v63 }
  0xf1   : > { %789 = vmatpush.msrb.mxu2 %v738_v62 }
  0xf2   : > { %768 = vmatpush.msrb.mxu1 %v723_v1 }
  0xf3   : > { %790 = vmatpush.msrb.mxu2 %v737_v0 }
  0xf4   : > { %769 = vmatpush.msrb.mxu1 %v722_v3 }
  0xf5   : > { %791 = vmatpush.msrb.mxu2 %v736_v2 }
  0xf6   : > { %770 = vmatpush.msrb.mxu1 %v721_v4 }
  0xf8   : > { %771 = vmatpush.msrb.mxu1 %v720_v5 }
 0x14d   : > { %v581_v55 = vpop.f32.mrf.mxu0 }
 0x14e   : > { %v582_v56 = vadd.f32 %v998_v54, %v581_v55 }
 0x150   : > { %vm584_vm11 = vcmp.gt.f32.partialorder %v582_v56, 0.0  ;;  %v585_v57 = vmul.f32 0.01, %v582_v56 }
 0x152   : > { %v586_v58 = vsel %vm584_vm11, %v582_v56, %v585_v57 }
 0x153   : > { %682 = vmatmul.f32.vlgmr.msra.gmra.mxu3 %v586_v58  ;;  %702 = vmatmul.f32.vlgmr.msrb.gmra.mxu0 %v586_v58 }
 0x155   : > { %v643_v12 = vpop.f32.mrf.mxu1 }
 0x157   : > { %v663_v7 = vpop.f32.mrf.mxu2 }
 0x1d0   : > { %v703_v9 = vpop.f32.mrf.mxu0 }
 0x1d1   : > { %v704_v10 = vadd.f32 %v703_v9, %v663_v7 }
 0x1d3   : > { %v713_v11 = vadd.f32 %v709_v8, %v704_v10 }
 0x1d5   : > { %vm715_vm12 = vcmp.gt.f32.partialorder %v713_v11, 0.0  ;;  %v717_v14 = vmul.f32 0.01, %v713_v11 }
 0x1d6   : > { %v683_v15 = vpop.f32.mrf.mxu3 }
 0x1d7   : > { %v684_v16 = vadd.f32 %v683_v15, %v643_v12  ;;  %v719_v17 = vsel %vm715_vm12, %v713_v11, %v717_v14 }
 0x1d8   : > { %792 = vmatmul.f32.vlgmr.msrb.gmra.mxu2 %v719_v17 }
 0x1d9   : > { %v712_v18 = vadd.f32 %v708_v13, %v684_v16 }
 0x1db   : > { %vm714_vm13 = vcmp.gt.f32.partialorder %v712_v18, 0.0  ;;  %v716_v19 = vmul.f32 0.01, %v712_v18 }
 0x1dd   : > { %v718_v20 = vsel %vm714_vm13, %v712_v18, %v716_v19 }
 0x1de   : > { %772 = vmatmul.f32.vlgmr.msrb.gmra.mxu1 %v718_v20 }
 0x25b   : > { %v773_v22 = vpop.f32.mrf.mxu1  ;;  %v793_v24 = vpop.f32.mrf.mxu2 }
 0x25c   : > { %v774_v23 = vadd.f32 %v999_v21, %v773_v22 }
 0x25e   : > { %v794_v25 = vadd.f32 %v793_v24, %v774_v23 }
 0x260   : > { %796 = vst [vmem:[#allocation9] sm:$0xff] %v794_v25 }
 0x261 PF: > { %s1362_s14 = sadd.s32 4294967295, %s1138_s13   ;;  %s807_s21 = sshll.u32 %s1354_s9, 4  ;;  %s808_s21 = int_to_ptr.hbm [resolvable:$true] %s807_s21 }
 0x262   : > { %p948_p0 = scmp.eq.s32.totalorder %s1362_s14, 1  ;;  %s1147_s30 = smov [#allocation9]  }
 0x263   : > { %s805_s19 = sshll.u32 %s1147_s30, 4  ;;  %s806_s19 = int_to_ptr.vmem [resolvable:$true] %s805_s19 }
 0x264   : > { %934 = dma.vmem_to_hbm [thread:$0]  (%p948_p0), %s806_s19, 128, %s808_s21, [#allocation6]  }
 0x265   : > { %1117 = dma.done.wait (%p948_p0), [#allocation6], 128  }
 0x266   : > { %1119 = vsyncadd (%p948_p0), [#allocation6], 4294967168 }
 0x267 PF: > { %s22_s13 = sadd.s32 1, %s1138_s13   ;;  %s1363_s11 = sld [smem:[#allocation14_spill]] }
 0x268   : > { %p19_p1 = scmp.ge.s32.totalorder %s22_s13, 4   ;;  %s1364_s20 = sld [smem:[#allocation13_spill]] }
 0x269   : > { %s1365_s30 = smov %s1126_s10 }
 0x26a   :  { %21 = sbr.rel (!%p19_p1) target bundleno = 5 (0x5), region = 150 }
 0x26d   : > { %s1366_s10 = smov %s1363_s11  ;;  %s1367_s11 = smov %s1134_s12 }
 0x26e   : > { %s1368_s12 = smov %s1364_s20 }
 0x26f   :  { %821 = vsyncpa [#allocation5], 1 }
 0x270   :  { %823 = vsyncpa [#allocation5 + $0x1], 1 }
 0x271   :  { %824 = vsyncpa [#allocation8], 1 }
 0x272   :  { %825 = vsyncpa [#allocation6], 1 }
 0x273   :  { %827 = vsyncpa [#allocation6 + $0x1], 1 }

</bundles_post_ra>
